<compile_context>
chip_gen: v5e
topology: v5e:2x2
jax: 0.10.0
libtpu: 0.0.40
codegen_flags: <defaults>
</compile_context>

<pallas_src>
import functools

import jax
import jax.numpy as jnp
from jax.experimental import pallas as pl
from jax.experimental.pallas import tpu as pltpu

_BIG = 1e30          # sentinel ||p||^2 for padded prototype columns -> weight == 0
_MAX_TILE_B = 512    # cap on batch tile rows (VMEM stays tiny even at this size)


def softsom_kernel(x_ref, p_ref, psq_ref, blended_ref, weights_ref, *, inv_temp):
    # x_ref:       (TB, D)      input tile
    # p_ref:       (N_pad, D)   zero-padded prototype table (resident every step)
    # psq_ref:     (1, N_pad)   precomputed ||p||^2 (padded columns = _BIG)
    # blended_ref: (TB, D)      output tile
    # weights_ref: (TB, N_pad)  output tile (lane-dense, padded cols are exactly 0)
    x = x_ref[...].astype(jnp.float32)                               # (TB, D)
    p = p_ref[...].astype(jnp.float32)                               # (N_pad, D)
    p_sq = psq_ref[...]                                              # (1, N_pad)

    # Squared Euclidean distances via ||x||^2 + ||p||^2 - 2 x.p  (MXU for x.p^T).
    x_sq = jnp.sum(x * x, axis=-1, keepdims=True)                    # (TB, 1)
    xp = jax.lax.dot_general(
        x, p,
        dimension_numbers=(((1,), (1,)), ((), ())),
        preferred_element_type=jnp.float32,
    )                                                                # (TB, N_pad)
    d2 = x_sq + p_sq - 2.0 * xp
    dists = jnp.sqrt(jnp.maximum(d2, 0.0))                           # (TB, N_pad)

    # softmax(-dists / temperature) along N (padded columns underflow to 0).
    logits = dists * (-inv_temp)
    m = jnp.max(logits, axis=-1, keepdims=True)
    e = jnp.exp(logits - m)
    w = e * pl.reciprocal(jnp.sum(e, axis=-1, keepdims=True), approx=False)

    # blended = weights @ prototypes  (MXU); zero-padded prototype rows contribute 0.
    blended = jnp.dot(w, p, preferred_element_type=jnp.float32)      # (TB, D)

    weights_ref[...] = w.astype(weights_ref.dtype)
    blended_ref[...] = blended.astype(blended_ref.dtype)


def soft_som_forward(x, prototypes, temperature=0.4, *, tile_b=None):
    B, D = x.shape
    N, D2 = prototypes.shape
    assert D == D2

    # --- batch tiling ------------------------------------------------------
    if tile_b is None:
        tile_b = B if B <= _MAX_TILE_B else _MAX_TILE_B
    if tile_b > B:
        tile_b = B
    if tile_b < B and tile_b % 8 != 0:
        tile_b = max(8, (tile_b // 8) * 8)
    B_pad = ((B + tile_b - 1) // tile_b) * tile_b
    x_pad = x if B_pad == B else jnp.pad(x, ((0, B_pad - B), (0, 0)))

    # --- prototype / lane padding (N -> multiple of 128) --------------------
    N_pad = ((N + 127) // 128) * 128
    p32 = prototypes.astype(jnp.float32)
    if N_pad != N:
        p_padded = jnp.pad(p32, ((0, N_pad - N), (0, 0)))            # zero rows
    else:
        p_padded = p32
    # Precompute ||p||^2 once; padded columns get a HUGE value so their softmax
    # weight is exactly 0 inside the kernel.
    p_sq = jnp.sum(p32 * p32, axis=-1)                               # (N,)
    p_sq = jnp.pad(p_sq, (0, N_pad - N), constant_values=_BIG)
    p_sq = p_sq.reshape(1, N_pad).astype(jnp.float32)

    # --- VMEM budget (double-buffered tiles + resident prototype table) -----
    per_step = 2 * 4 * (tile_b * D + tile_b * N_pad + tile_b * D)    # x, weights, blended
    resident = 2 * 4 * (N_pad * D + N_pad)                           # prototypes, p_sq
    vmem_limit = int((per_step + resident) * 1.25)
    vmem_limit = min(max(vmem_limit, 32 * 1024 * 1024), 64 * 1024 * 1024)

    kernel = functools.partial(softsom_kernel, inv_temp=1.0 / float(temperature))
    blended, weights = pl.pallas_call(
        kernel,
        out_shape=(
            jax.ShapeDtypeStruct((B_pad, D), x.dtype),
            jax.ShapeDtypeStruct((B_pad, N_pad), x.dtype),
        ),
        grid_spec=pltpu.PrefetchScalarGridSpec(
            num_scalar_prefetch=0,
            grid=(B_pad // tile_b,),
            in_specs=[
                pl.BlockSpec((tile_b, D), lambda i: (i, 0)),   # x tile over batch
                pl.BlockSpec((N_pad, D), lambda i: (0, 0)),    # full prototype table
                pl.BlockSpec((1, N_pad), lambda i: (0, 0)),    # precomputed ||p||^2
            ],
            out_specs=(
                pl.BlockSpec((tile_b, D), lambda i: (i, 0)),      # blended tile
                pl.BlockSpec((tile_b, N_pad), lambda i: (i, 0)),  # weights tile (lane-dense)
            ),
        ),
        compiler_params=pltpu.CompilerParams(
            dimension_semantics=("parallel",),
            vmem_limit_bytes=vmem_limit,
        ),
    )(x_pad, p_padded, p_sq)

    # Slice away batch padding and the padded (zero-weight) prototype columns.
    return blended[:B], weights[:B, :N]


def soft_som_reference(x, prototypes, temperature=0.4):
    # Pure-JAX reference (mirrors the PyTorch module).
    d2 = jnp.sum((x[:, None, :] - prototypes[None, :, :]) ** 2, axis=-1)
    dists = jnp.sqrt(jnp.maximum(d2, 0.0))
    weights = jax.nn.softmax(-dists / temperature, axis=-1)
    blended = weights @ prototypes
    return blended, weights


if __name__ == "__main__":
    # Module config: input_dim=32, som_dim=10 -> num_nodes=100, temperature=0.4
    input_dim = 32
    som_dim = 10
    num_nodes = som_dim * som_dim
    temperature = 0.4
    batch = 16

    key = jax.random.PRNGKey(0)
    kx, kp = jax.random.split(key)
    x = jax.random.normal(kx, (batch, input_dim), dtype=jnp.float32)
    # Deterministic "randn" init for the prototypes parameter (shape (N, D)).
    prototypes = jax.random.normal(kp, (num_nodes, input_dim), dtype=jnp.float32)

    blended, weights = soft_som_forward(x, prototypes, temperature)
    jax.block_until_ready((blended, weights))

    blended_ref, weights_ref = soft_som_reference(x, prototypes, temperature)
    assert blended.shape == (batch, input_dim)
    assert weights.shape == (batch, num_nodes)
    assert jnp.allclose(blended, blended_ref, atol=1e-4, rtol=1e-4)
    assert jnp.allclose(weights, weights_ref, atol=1e-5, rtol=1e-4)

    print("KERNEL_OK")
</pallas_src>

<mosaic_0001>
module attributes {stable_mosaic.version = 11 : i64} {
  func.func @softsom_kernel(%arg0: i32, %arg1: memref<16x32xf32, #tpu.memory_space<vmem>>, %arg2: memref<128x32xf32, #tpu.memory_space<vmem>>, %arg3: memref<1x128xf32, #tpu.memory_space<vmem>>, %arg4: memref<16x32xf32, #tpu.memory_space<vmem>>, %arg5: memref<16x128xf32, #tpu.memory_space<vmem>>) attributes {dimension_semantics = [#tpu.dimension_semantics<parallel>], iteration_bounds = array<i64: 1>, scalar_prefetch = 0 : i64, scratch_operands = 0 : i64, tpu.core_type = #tpu.core_type<tc>, window_params = [{transform_indices = @transform_0, window_bounds = array<i64: 16, 32>}, {pipeline_mode = #tpu.pipeline_mode<synchronous>, transform_indices = @transform_1, window_bounds = array<i64: 128, 32>}, {pipeline_mode = #tpu.pipeline_mode<synchronous>, transform_indices = @transform_2, window_bounds = array<i64: 1, 128>}, {transform_indices = @transform_3, window_bounds = array<i64: 16, 32>}, {transform_indices = @transform_4, window_bounds = array<i64: 16, 128>}]} {
    %c0 = arith.constant 0 : index
    %c0_0 = arith.constant 0 : index
    %0 = vector.load %arg1[%c0, %c0_0] : memref<16x32xf32, #tpu.memory_space<vmem>>, vector<16x32xf32>
    %c0_1 = arith.constant 0 : index
    %c0_2 = arith.constant 0 : index
    %1 = vector.load %arg2[%c0_1, %c0_2] : memref<128x32xf32, #tpu.memory_space<vmem>>, vector<128x32xf32>
    %c0_3 = arith.constant 0 : index
    %c0_4 = arith.constant 0 : index
    %2 = vector.load %arg3[%c0_3, %c0_4] : memref<1x128xf32, #tpu.memory_space<vmem>>, vector<1x128xf32>
    %3 = arith.mulf %0, %0 : vector<16x32xf32>
    %cst = arith.constant dense<0.000000e+00> : vector<16xf32>
    %4 = vector.multi_reduction <add>, %3, %cst [1] : vector<16x32xf32> to vector<16xf32>
    %5 = vector.shape_cast %4 : vector<16xf32> to vector<16x1xf32>
    %cst_5 = arith.constant dense<0.000000e+00> : vector<16x128xf32>
    %6 = tpu.matmul %0, %1, %cst_5 {dimension_numbers = #tpu.dot_dimension_numbers<[1], [1], [0], [0], [0, 0, 1, 0], [], []>} : vector<16x32xf32>, vector<128x32xf32>, vector<16x128xf32> -> vector<16x128xf32>
    %7 = vector.broadcast %5 : vector<16x1xf32> to vector<16x128xf32>
    %8 = vector.broadcast %2 : vector<1x128xf32> to vector<16x128xf32>
    %9 = arith.addf %7, %8 : vector<16x128xf32>
    %cst_6 = arith.constant 2.000000e+00 : f32
    %10 = vector.broadcast %cst_6 : f32 to vector<16x128xf32>
    %11 = arith.mulf %10, %6 : vector<16x128xf32>
    %12 = arith.subf %9, %11 : vector<16x128xf32>
    %cst_7 = arith.constant 0.000000e+00 : f32
    %13 = vector.broadcast %cst_7 : f32 to vector<16x128xf32>
    %14 = arith.maximumf %12, %13 : vector<16x128xf32>
    %15 = math.sqrt %14 : vector<16x128xf32>
    %cst_8 = arith.constant -2.500000e+00 : f32
    %16 = vector.broadcast %cst_8 : f32 to vector<16x128xf32>
    %17 = arith.mulf %15, %16 : vector<16x128xf32>
    %cst_9 = arith.constant dense<0xFF800000> : vector<16xf32>
    %18 = vector.multi_reduction <maximumf>, %17, %cst_9 [1] : vector<16x128xf32> to vector<16xf32>
    %19 = vector.shape_cast %18 : vector<16xf32> to vector<16x1xf32>
    %20 = vector.broadcast %19 : vector<16x1xf32> to vector<16x128xf32>
    %21 = arith.subf %17, %20 : vector<16x128xf32>
    %22 = math.exp %21 : vector<16x128xf32>
    %cst_10 = arith.constant dense<0.000000e+00> : vector<16xf32>
    %23 = vector.multi_reduction <add>, %22, %cst_10 [1] : vector<16x128xf32> to vector<16xf32>
    %24 = vector.shape_cast %23 : vector<16xf32> to vector<16x1xf32>
    %25 = tpu.reciprocal %24 : vector<16x1xf32> -> vector<16x1xf32>
    %26 = vector.broadcast %25 : vector<16x1xf32> to vector<16x128xf32>
    %27 = arith.mulf %22, %26 : vector<16x128xf32>
    %cst_11 = arith.constant dense<0.000000e+00> : vector<16x32xf32>
    %28 = tpu.matmul %27, %1, %cst_11 {dimension_numbers = #tpu.dot_dimension_numbers<[1], [0], [0], [1], [0, 0, 1, 1], [], []>} : vector<16x128xf32>, vector<128x32xf32>, vector<16x32xf32> -> vector<16x32xf32>
    %c0_12 = arith.constant 0 : index
    %c0_13 = arith.constant 0 : index
    %29 = vector.load %arg5[%c0_12, %c0_13] : memref<16x128xf32, #tpu.memory_space<vmem>>, vector<16x128xf32>
    tpu.vector_store %arg5[%c0_12, %c0_13], %27 {strides = array<i32>} : memref<16x128xf32, #tpu.memory_space<vmem>>, vector<16x128xf32>,
    %c0_14 = arith.constant 0 : index
    %c0_15 = arith.constant 0 : index
    %30 = vector.load %arg4[%c0_14, %c0_15] : memref<16x32xf32, #tpu.memory_space<vmem>>, vector<16x32xf32>
    tpu.vector_store %arg4[%c0_14, %c0_15], %28 {strides = array<i32>} : memref<16x32xf32, #tpu.memory_space<vmem>>, vector<16x32xf32>,
    return
  }
  func.func @transform_0(%arg0: i32) -> (i32, i32) {
    %c0_i32 = arith.constant 0 : i32
    %c0_i32_0 = arith.constant 0 : i32
    return %arg0, %c0_i32 : i32, i32
  }
  func.func @transform_1(%arg0: i32) -> (i32, i32) {
    %c0_i32 = arith.constant 0 : i32
    %c0_i32_0 = arith.constant 0 : i32
    %c0_i32_1 = arith.constant 0 : i32
    return %c0_i32, %c0_i32_0 : i32, i32
  }
  func.func @transform_2(%arg0: i32) -> (i32, i32) {
    %c0_i32 = arith.constant 0 : i32
    %c0_i32_0 = arith.constant 0 : i32
    %c0_i32_1 = arith.constant 0 : i32
    return %c0_i32, %c0_i32_0 : i32, i32
  }
  func.func @transform_3(%arg0: i32) -> (i32, i32) {
    %c0_i32 = arith.constant 0 : i32
    %c0_i32_0 = arith.constant 0 : i32
    return %arg0, %c0_i32 : i32, i32
  }
  func.func @transform_4(%arg0: i32) -> (i32, i32) {
    %c0_i32 = arith.constant 0 : i32
    %c0_i32_0 = arith.constant 0 : i32
    return %arg0, %c0_i32 : i32, i32
  }
}

</mosaic_0001>

<bundles_post_ra>
// kernel: tpu_custom_call.1
= control target key start
LH: loop header
LB: loop body
LE: loop exit
PB: predicated region body
PF: predicated region fallthrough
CT: control target
= control target key end

     0   :  { %10 = vsyncpa [#allocation3], 0  ;;  %vm39_vm0 = vcmask 261120   ;;  %s500_s0 = inlined_call_operand.vmem [shape: f32[16,32], index: 0, kind: input, shape index: {}]   ;;  %s501_s1 = inlined_call_operand.vmem [shape: f32[128,32], index: 1, kind: input, shape index: {}]   ;;  %s502_s2 = inlined_call_operand.vmem [shape: f32[1,128], index: 2, kind: input, shape index: {}]   ;;  %s503_s3 = inlined_call_operand.hbm [shape: f32[16,32], index: 3, kind: output, shape index: {0}]   ;;  %s504_s4 = inlined_call_operand.hbm [shape: f32[16,128], index: 4, kind: output, shape index: {1}]  }
   0x1   :  { %v35_v0 = vld [vmem:[%s501_s1 + $0x78] sm:$0xff]  ;;  %v34_v1 = vld [vmem:[%s501_s1 + $0x70] sm:$0xff] }
   0x2   :  { %267 = vmatpush.xpose.msk.msra.mxu0 %vm39_vm0, %v35_v0  ;;  %285 = vmatpush.xpose.msk.msra.mxu2 %vm39_vm0, %v35_v0 }
   0x3   :  { %204 = vmatpush.msra.mxu1 %v35_v0 }
   0x4   :  { %11 = vsyncpa [#allocation5], 0  ;;  %v33_v2 = vld [vmem:[%s501_s1 + $0x68] sm:$0xff]  ;;  %v32_v3 = vld [vmem:[%s501_s1 + $0x60] sm:$0xff]  ;;  %s250_s28 = sshll.u32 %s504_s4, 4  ;;  %s371_s29 = smov 128   ;;  %s251_s28 = int_to_ptr.hbm [resolvable:$true] %s250_s28 }
   0x5   :  { %205 = vmatpush.msra.mxu1 %v34_v1  ;;  %v31_v4 = vld [vmem:[%s501_s1 + $0x58] sm:$0xff]  ;;  %v30_v5 = vld [vmem:[%s501_s1 + $0x50] sm:$0xff]  ;;  %v29_v6 = vld [vmem:[%s501_s1 + $0x48] sm:$0xff]  ;;  %s372_s30 = smov 8   ;;  %s373_s5 = smov [#allocation2]  }
   0x6   :  { %268 = vmatpush.xpose.msk.msra.mxu0 %vm39_vm0, %v34_v1  ;;  %286 = vmatpush.xpose.msk.msra.mxu2 %vm39_vm0, %v34_v1  ;;  %v28_v7 = vld [vmem:[%s501_s1 + $0x40] sm:$0xff]  ;;  %v27_v8 = vld [vmem:[%s501_s1 + $0x38] sm:$0xff]  ;;  %v26_v9 = vld [vmem:[%s501_s1 + $0x30] sm:$0xff]  ;;  %s235_s6 = sshll.u32 %s373_s5, 4  ;;  %s237_s9 = sshll.u32 %s503_s3, 4  ;;  %s236_s6 = int_to_ptr.vmem [resolvable:$true] %s235_s6  ;;  %s238_s9 = int_to_ptr.hbm [resolvable:$true] %s237_s9 }
   0x7   :  { %206 = vmatpush.msra.mxu1 %v33_v2  ;;  %v25_v10 = vld [vmem:[%s501_s1 + $0x28] sm:$0xff]  ;;  %v24_v11 = vld [vmem:[%s501_s1 + $0x20] sm:$0xff]  ;;  %v23_v12 = vld [vmem:[%s501_s1 + $0x18] sm:$0xff] }
   0x8   :  { %v22_v13 = vld [vmem:[%s501_s1 + $0x10] sm:$0xff]  ;;  %v21_v14 = vld [vmem:[%s501_s1 + $0x8] sm:$0xff]  ;;  %v20_v15 = vld [vmem:[%s501_s1] sm:$0xff] }
   0x9   :  { %207 = vmatpush.msra.mxu1 %v32_v3  ;;  %v18_v16 = vld [vmem:[%s500_s0] sm:$0xff]  ;;  %v19_v19 = vld [vmem:[%s500_s0 + $0x8] sm:$0xff] }
   0xa   :  { %269 = vmatpush.xpose.msk.msra.mxu0 %vm39_vm0, %v33_v2  ;;  %287 = vmatpush.xpose.msk.msra.mxu2 %vm39_vm0, %v33_v2  ;;  %v37_v17 = vmul.f32 %v18_v16, %v18_v16  ;;  %v38_v20 = vmul.f32 %v19_v19, %v19_v19  ;;  %v305_v23 = vld [vmem:[%s502_s2] ss:$0 sm:$0xff]  ;;  %s370_s2 = smov [#allocation4]  }
   0xb   :  { %208 = vmatpush.msra.mxu1 %v31_v4  ;;  %s248_s25 = sshll.u32 %s370_s2, 4  ;;  %s249_s25 = int_to_ptr.vmem [resolvable:$true] %s248_s25 }
   0xc   :  { %v40_v18 = vsel %vm39_vm0, %v37_v17, 0.0  ;;  %v43_v21 = vsel %vm39_vm0, %v38_v20, 0.0 }
   0xd   :  { %209 = vmatpush.msra.mxu1 %v30_v5  ;;  %41 = vadd.xlane.f32.xlu0 %v40_v18 }
   0xe   :  { %270 = vmatpush.xpose.msk.msra.mxu0 %vm39_vm0, %v32_v3  ;;  %288 = vmatpush.xpose.msk.msra.mxu2 %vm39_vm0, %v32_v3 }
   0xf   :  { %210 = vmatpush.msra.mxu1 %v29_v6 }
  0x11   :  { %211 = vmatpush.msra.mxu1 %v28_v7 }
  0x12   :  { %271 = vmatpush.xpose.msk.msra.mxu0 %vm39_vm0, %v31_v4  ;;  %289 = vmatpush.xpose.msk.msra.mxu2 %vm39_vm0, %v31_v4 }
  0x13   :  { %212 = vmatpush.msra.mxu1 %v27_v8 }
  0x15   :  { %213 = vmatpush.msra.mxu1 %v26_v9  ;;  %44 = vadd.xlane.f32.xlu0 %v43_v21 }
  0x16   :  { %272 = vmatpush.xpose.msk.msra.mxu0 %vm39_vm0, %v30_v5  ;;  %290 = vmatpush.xpose.msk.msra.mxu2 %vm39_vm0, %v30_v5 }
  0x17   :  { %214 = vmatpush.msra.mxu1 %v25_v10 }
  0x19   :  { %215 = vmatpush.msra.mxu1 %v24_v11 }
  0x1a   :  { %273 = vmatpush.xpose.msk.msra.mxu0 %vm39_vm0, %v29_v6  ;;  %291 = vmatpush.xpose.msk.msra.mxu2 %vm39_vm0, %v29_v6 }
  0x1b   :  { %216 = vmatpush.msra.mxu1 %v23_v12 }
  0x1d   :  { %217 = vmatpush.msra.mxu1 %v22_v13 }
  0x1e   :  { %274 = vmatpush.xpose.msk.msra.mxu0 %vm39_vm0, %v28_v7  ;;  %292 = vmatpush.xpose.msk.msra.mxu2 %vm39_vm0, %v28_v7 }
  0x1f   :  { %218 = vmatpush.msra.mxu1 %v21_v14 }
  0x21   :  { %219 = vmatpush.msra.mxu1 %v20_v15 }
  0x22   :  { %275 = vmatpush.xpose.msk.msra.mxu0 %vm39_vm0, %v27_v8  ;;  %293 = vmatpush.xpose.msk.msra.mxu2 %vm39_vm0, %v27_v8 }
  0x26   :  { %276 = vmatpush.xpose.msk.msra.mxu0 %vm39_vm0, %v26_v9  ;;  %294 = vmatpush.xpose.msk.msra.mxu2 %vm39_vm0, %v26_v9 }
  0x2a   :  { %277 = vmatpush.xpose.msk.msra.mxu0 %vm39_vm0, %v25_v10  ;;  %295 = vmatpush.xpose.msk.msra.mxu2 %vm39_vm0, %v25_v10 }
  0x2e   :  { %278 = vmatpush.xpose.msk.msra.mxu0 %vm39_vm0, %v24_v11  ;;  %296 = vmatpush.xpose.msk.msra.mxu2 %vm39_vm0, %v24_v11 }
  0x32   :  { %279 = vmatpush.xpose.msk.msra.mxu0 %vm39_vm0, %v23_v12  ;;  %297 = vmatpush.xpose.msk.msra.mxu2 %vm39_vm0, %v23_v12 }
  0x36   :  { %280 = vmatpush.xpose.msk.msra.mxu0 %vm39_vm0, %v22_v13  ;;  %298 = vmatpush.xpose.msk.msra.mxu2 %vm39_vm0, %v22_v13 }
  0x3a   :  { %281 = vmatpush.xpose.msk.msra.mxu0 %vm39_vm0, %v21_v14  ;;  %299 = vmatpush.xpose.msk.msra.mxu2 %vm39_vm0, %v21_v14 }
  0x3e   :  { %282 = vmatpush.xpose.msk.msra.mxu0 %vm39_vm0, %v20_v15  ;;  %300 = vmatpush.xpose.msk.msra.mxu2 %vm39_vm0, %v20_v15 }
  0x41   :  { %283 = vmatmul.msk.f32.vlgmr.msra.gmra.mxu0 %vm39_vm0, %v18_v16  ;;  %284 = vmatmul.msk.f32.vlgmr.msra.gmra.mxu2 %vm39_vm0, %v19_v19 }
  0x80   :  { %v42_v22 = vpop.xlane.xlu0 %41 }
  0x81   :  { %v126_v24 = vadd.f32 %v305_v23, %v42_v22 }
  0x88   :  { %v45_v27 = vpop.xlane.xlu0 %44 }
  0x89   :  { %v127_v30 = vadd.f32 %v305_v23, %v45_v27 }
  0xbe   :  { %v117_v25 = vpop.f32.mrf.mxu0 }
  0xbf   :  { %v128_v26 = vmul.f32 2.0, %v117_v25 }
  0xc1   :  { %v130_v28 = vsub.f32 %v126_v24, %v128_v26 }
  0xc3   :  { %v132_v29 = vmax.f32 %v130_v28, 0.0 }
  0xc4   :  { %v120_v31 = vpop.f32.mrf.mxu2 }
  0xc5   :  { %v129_v32 = vmul.f32 2.0, %v120_v31  ;;  %306 = vrsqrt.f32 %v132_v29  ;;  %vm141_vm1 = vcmp.eq.f32.partialorder %v132_v29, inf  ;;  %v144_v46 = vand.u32 2147483648, %v132_v29 }
  0xc6   :  { %vm143_vm2 = vcmp.eq.f32.partialorder %v132_v29, 0.0 }
  0xc7   :  { %v131_v33 = vsub.f32 %v127_v30, %v129_v32 }
  0xc9   :  { %v133_v34 = vmax.f32 %v131_v33, 0.0 }
  0xcb   :  { %v307_v35 = vpop.eup %306  ;;  %308 = vrsqrt.f32 %v133_v34  ;;  %vm153_vm3 = vcmp.eq.f32.partialorder %v133_v34, inf  ;;  %v156_v53 = vand.u32 2147483648, %v133_v34  ;;  %vm155_vm4 = vcmp.eq.f32.partialorder %v133_v34, 0.0 }
  0xcc   :  { %v135_v36 = vmul.f32 %v307_v35, %v132_v29 }
  0xce   :  { %v136_v37 = vmul.f32 %v307_v35, %v135_v36 }
  0xd0   :  { %v137_v38 = vmul.f32 0.5, %v136_v37 }
  0xd1   :  { %v309_v39 = vpop.eup %308 }
  0xd2   :  { %v138_v40 = vsub.f32 1.5, %v137_v38  ;;  %v147_v41 = vmul.f32 %v309_v39, %v133_v34 }
  0xd4   :  { %v139_v42 = vmul.f32 %v307_v35, %v138_v40  ;;  %v148_v43 = vmul.f32 %v309_v39, %v147_v41 }
  0xd6   :  { %v140_v44 = vmul.f32 %v139_v42, %v132_v29  ;;  %v149_v45 = vmul.f32 0.5, %v148_v43 }
  0xd8   :  { %v142_v47 = vsel %vm141_vm1, %v132_v29, %v140_v44  ;;  %v150_v48 = vsub.f32 1.5, %v149_v45 }
  0xd9   :  { %v145_v49 = vsel %vm143_vm2, %v144_v46, %v142_v47 }
  0xda   :  { %v158_v50 = vmul.f32 -2.5, %v145_v49  ;;  %v151_v51 = vmul.f32 %v309_v39, %v150_v48 }
  0xdc   :  { %160 = vmax.xlane.f32.xlu1 %v158_v50  ;;  %v152_v52 = vmul.f32 %v151_v51, %v133_v34 }
  0xde   :  { %v154_v54 = vsel %vm153_vm3, %v133_v34, %v152_v52 }
  0xdf   :  { %v157_v55 = vsel %vm155_vm4, %v156_v53, %v154_v54 }
  0xe0   :  { %v159_v56 = vmul.f32 -2.5, %v157_v55 }
  0xe4   :  { %162 = vmax.xlane.f32.xlu1 %v159_v56 }
 0x14f   :  { %v161_v57 = vpop.xlane.xlu1 %160 }
 0x150   :  { %v164_v58 = vsub.f32 %v158_v50, %v161_v57 }
 0x152   :  { %v166_v59 = vmul.f32 1.442695, %v164_v58 }
 0x154   :  { %310 = vpow2.f32 %v166_v59 }
 0x157   :  { %v163_v60 = vpop.xlane.xlu1 %162 }
 0x158   :  { %v165_v61 = vsub.f32 %v159_v56, %v163_v60 }
 0x15a   :  { %v311_v62 = vpop.eup %310  ;;  %v168_v63 = vmul.f32 1.442695, %v165_v61 }
 0x15b   :  { %170 = vadd.xlane.f32.xlu2 %v311_v62 }
 0x15c   :  { %312 = vpow2.f32 %v168_v63 }
 0x162   :  { %v313_v0 = vpop.eup %312 }
 0x163   :  { %172 = vadd.xlane.f32.xlu2 %v313_v0 }
 0x1ce   :  { %v171_v1 = vpop.xlane.xlu2 %170 }
 0x1cf   :  { %314 = vrcp.f32 %v171_v1  ;;  %v185_v6 = vand.u32 2147483648, %v171_v1  ;;  %v183_v8 = vand.u32 2147483647, %v171_v1  ;;  %vm179_vm6 = vweird.f32 %v171_v1 }
 0x1d1   :  { %v186_v11 = vor.u32 1.1754944e-38, %v185_v6  ;;  %vm184_vm8 = vcmp.eq.f32.partialorder %v183_v8, 8.507059e+37 }
 0x1d5   :  { %v315_v2 = vpop.eup %314 }
 0x1d6   :  { %v175_v3 = vmul.f32 %v315_v2, %v171_v1  ;;  %v173_v4 = vpop.xlane.xlu2 %172  ;;  %vm180_vm5 = vweird.f32 %v315_v2 }
 0x1d7   :  { %316 = vrcp.f32 %v173_v4  ;;  %vm181_vm7 = vmor %vm179_vm6, %vm180_vm5  ;;  %v199_v17 = vand.u32 2147483648, %v173_v4  ;;  %v197_v19 = vand.u32 2147483647, %v173_v4  ;;  %vm193_vm10 = vweird.f32 %v173_v4 }
 0x1d8   :  { %v176_v5 = vsub.f32 1.0, %v175_v3 }
 0x1d9   :  { %v200_v21 = vor.u32 1.1754944e-38, %v199_v17  ;;  %vm198_vm12 = vcmp.eq.f32.partialorder %v197_v19, 8.507059e+37 }
 0x1da   :  { %v177_v7 = vmul.f32 %v315_v2, %v176_v5 }
 0x1dc   :  { %v178_v9 = vadd.f32 %v315_v2, %v177_v7 }
 0x1dd   :  { %v317_v10 = vpop.eup %316 }
 0x1de   :  { %v189_v12 = vmul.f32 %v317_v10, %v173_v4  ;;  %v182_v13 = vsel %vm181_vm7, %v315_v2, %v178_v9  ;;  %vm194_vm9 = vweird.f32 %v317_v10 }
 0x1df   :  { %v187_v14 = vsel %vm184_vm8, %v186_v11, %v182_v13  ;;  %vm195_vm11 = vmor %vm193_vm10, %vm194_vm9 }
 0x1e0   :  { %v190_v15 = vsub.f32 1.0, %v189_v12  ;;  %v202_v16 = vmul.f32 %v311_v62, %v187_v14 }
 0x1e2   :  { %v191_v18 = vmul.f32 %v317_v10, %v190_v15  ;;  %220 = vmatmul.f32.vlgmr.msra.gmra.mxu1 %v202_v16  ;;  %227 = vst [vmem:[#allocation4] sm:$0xff] %v202_v16 }
 0x1e4   :  { %v192_v20 = vadd.f32 %v317_v10, %v191_v18 }
 0x1e6   :  { %v196_v22 = vsel %vm195_vm11, %v317_v10, %v192_v20 }
 0x1e7   :  { %v201_v23 = vsel %vm198_vm12, %v200_v21, %v196_v22 }
 0x1e8   :  { %v203_v24 = vmul.f32 %v313_v0, %v201_v23 }
 0x1ea   :  { %223 = vmatmul.f32.gmra.mxu1 %v203_v24  ;;  %228 = vst [vmem:[#allocation4 + $0x8] sm:$0xff] %v203_v24 }
 0x1eb   :  { %256 = dma.vmem_to_hbm [thread:$0]  %s249_s25, 256, %s251_s28, [#allocation5], %s371_s29, %s371_s29, %s372_s30  }
 0x25f   :  { %v221_v25 = vpop.f32.mrf.mxu1 }
 0x260   :  { %229 = vst.msk [vmem:[#allocation2] sm:$0xff] %vm39_vm0, %v221_v25 }
 0x267   :  { %v224_v26 = vpop.f32.mrf.mxu1 }
 0x268   :  { %230 = vst.msk [vmem:[#allocation2 + $0x8] sm:$0xff] %vm39_vm0, %v224_v26 }
 0x269   :  { %243 = dma.vmem_to_hbm [thread:$0]  %s236_s6, 256, %s238_s9, [#allocation3], %s371_s29, %s371_s29, %s372_s30  }
 0x26a   :  { %366 = dma.done.wait [#allocation3], 256  }
 0x26b   :  { %367 = vsyncadd [#allocation3], 4294967040 }
 0x26c   :  { %368 = dma.done.wait [#allocation5], 256  }
 0x26d   :  { %369 = vsyncadd [#allocation5], 4294967040 }
 0x26e   :  { %265 = vsyncpa [#allocation3], 1 }
 0x26f   :  { %266 = vsyncpa [#allocation5], 1 }

</bundles_post_ra>
